<compile_context>
chip_gen: v6e
topology: v6e:2x2x1
jax: 0.10.0
libtpu: 0.0.40
codegen_flags: <defaults>
</compile_context>

<pallas_src>
import jax
import jax.numpy as jnp
from jax.experimental import pallas as pl
from jax.experimental.pallas import tpu as pltpu


def _round_up(x: int, m: int) -> int:
    return (x + m - 1) // m * m


def _ceil_div(a: int, b: int) -> int:
    return -(-a // b)


# ---------------------------------------------------------------------------
# Kernel
# ---------------------------------------------------------------------------
def actor_critic_kernel(x_ref, w1_ref, w23_ref, b_ref, out_ref):
    """Fused actor+critic MLP: three block-packed matmuls over lane-padded slabs.

    x_ref   : [tb, k_pad]         (mm_dtype)
    w1_ref  : [k_pad, d_pad]      layer 1 = [aw1 | cw1]            (mm_dtype)
    w23_ref : [2, d_pad, d_pad]   layers 2/3 = block-diag(a*, c*)  (mm_dtype)
    b_ref   : [3, d_pad]          biases, fp32
    out_ref : [tb, d_pad]         [logits | value | zero pad], fp32
    """
    mm_dtype = w23_ref.dtype                 # fp32 or bf16 (MXU operands only)
    b = b_ref[...]                           # [3, d_pad], fp32

    # layer 1: shared input, [actor | critic] concatenated along the output lanes
    h = jnp.dot(x_ref[...], w1_ref[...], preferred_element_type=jnp.float32) + b[0:1, :]
    h = jnp.tanh(h).astype(mm_dtype)         # tanh in fp32 (EUP), cast only for the MXU

    # layer 2: block-diagonal(aw2, cw2)
    h = jnp.dot(h, w23_ref[0], preferred_element_type=jnp.float32) + b[1:2, :]
    h = jnp.tanh(h).astype(mm_dtype)

    # layer 3: block-diagonal(aw3, cw3) -> [logits | value | zero pad], lane-dense store
    out = jnp.dot(h, w23_ref[1], preferred_element_type=jnp.float32) + b[2:3, :]
    out_ref[...] = out.astype(out_ref.dtype)


# ---------------------------------------------------------------------------
# Host-side parameter packing (actor+critic fused into 3 padded layers)
# ---------------------------------------------------------------------------
def pack_params(p, obs_dim: int, act_dim: int, hidden: int, *,
                mm_dtype=jnp.bfloat16):
    """Pack the 12 per-layer tensors into three slabs.

    Weights are stored [in_features, out_features] (transpose of PyTorch's [out, in]).
    Returns (w1 [k_pad, d_pad], w23 [2, d_pad, d_pad], b [3, d_pad]) with the
    weight slabs cast to `mm_dtype` (MXU operand dtype); biases stay fp32.
    """
    h2 = 2 * hidden
    d_pad = _round_up(max(h2, act_dim + 1), 128)
    k_pad = _round_up(obs_dim, 8)

    # layer 1: [aw1 | cw1] over the shared input
    w1 = jnp.zeros((k_pad, d_pad), jnp.float32)
    w1 = w1.at[:obs_dim, :hidden].set(p["aw1"])
    w1 = w1.at[:obs_dim, hidden:h2].set(p["cw1"])

    # layers 2/3: block-diagonal packing
    w23 = jnp.zeros((2, d_pad, d_pad), jnp.float32)
    w23 = w23.at[0, :hidden, :hidden].set(p["aw2"])
    w23 = w23.at[0, hidden:h2, hidden:h2].set(p["cw2"])
    w23 = w23.at[1, :hidden, :act_dim].set(p["aw3"])
    w23 = w23.at[1, hidden:h2, act_dim:act_dim + 1].set(p["cw3"])

    b = jnp.zeros((3, d_pad), jnp.float32)
    b = b.at[0, :hidden].set(p["ab1"][0]).at[0, hidden:h2].set(p["cb1"][0])
    b = b.at[1, :hidden].set(p["ab2"][0]).at[1, hidden:h2].set(p["cb2"][0])
    b = b.at[2, :act_dim].set(p["ab3"][0]).at[2, act_dim:act_dim + 1].set(p["cb3"][0])

    return w1.astype(mm_dtype), w23.astype(mm_dtype), b


# ---------------------------------------------------------------------------
# Wrapper
# ---------------------------------------------------------------------------
def actor_critic_forward(x, w1_slab, w23_slab, b_slab, act_dim: int, *,
                         tile_b: int = 2048):
    """x: [B, obs_dim]. Returns (logits [B, act_dim], value [B])."""
    B, obs_dim = x.shape
    k_pad, d_pad = w1_slab.shape
    mm_dtype = w23_slab.dtype

    # --- batch tiling -------------------------------------------------------
    # Pick n_tiles so waste (b_pad - B) is < 8 rows per tile, cap the tile at
    # tile_b (keeps double-buffered x/out well under v5e's 16 MiB scoped VMEM),
    # and force >=2 tiles for mid/large batches so both v7x TensorCores work.
    b8 = _round_up(max(B, 1), 8)
    n_tiles = max(1, _ceil_div(b8, tile_b))
    if n_tiles == 1 and B >= 512:
        n_tiles = 2
    tb = _round_up(_ceil_div(B, n_tiles), 8)
    b_pad = n_tiles * tb

    # --- input layout (no d_pad feature padding; zero-pad only to 8 sublanes /
    # the batch tile so no garbage ever enters the K axis) ---------------------
    if b_pad != B or k_pad != obs_dim:
        x_p = jnp.zeros((b_pad, k_pad), x.dtype).at[:B, :obs_dim].set(x)
    else:
        x_p = x
    x_p = x_p.astype(mm_dtype)

    out = pl.pallas_call(
        actor_critic_kernel,
        out_shape=jax.ShapeDtypeStruct((b_pad, d_pad), jnp.float32),
        grid_spec=pltpu.PrefetchScalarGridSpec(
            num_scalar_prefetch=0,
            grid=(n_tiles,),
            in_specs=[
                pl.BlockSpec((tb, k_pad), lambda i: (i, 0)),            # x tile (pipelined)
                pl.BlockSpec((k_pad, d_pad), lambda i: (0, 0)),          # layer-1 weights (resident)
                pl.BlockSpec((2, d_pad, d_pad), lambda i: (0, 0, 0)),    # layer-2/3 weights (resident)
                pl.BlockSpec((3, d_pad), lambda i: (0, 0)),              # biases (resident)
            ],
            out_specs=pl.BlockSpec((tb, d_pad), lambda i: (i, 0)),
        ),
        compiler_params=pltpu.CompilerParams(
            dimension_semantics=("parallel",),   # shard batch tiles across TCs on v7x
        ),
        # Tuning knob: if profiling shows exposed x DMA at large tb, add
        # pipeline_mode=pl.Buffered(3) on the x BlockSpec.
    )(x_p, w1_slab, w23_slab, b_slab)

    # Glue (outside the kernel): slice logits / value out of the lane-dense slab.
    logits = out[:B, :act_dim]
    value = out[:B, act_dim]
    return logits, value


# ---------------------------------------------------------------------------
# Deterministic init mimicking PyTorch nn.Linear default: U(-1/sqrt(fan_in), +)
# ---------------------------------------------------------------------------
def init_params(key, obs_dim, act_dim, hidden):
    def linear(key, fan_in, fan_out):
        kw, kb = jax.random.split(key)
        bound = 1.0 / jnp.sqrt(jnp.float32(fan_in))
        w = jax.random.uniform(kw, (fan_in, fan_out), jnp.float32, -bound, bound)
        b = jax.random.uniform(kb, (1, fan_out), jnp.float32, -bound, bound)
        return w, b

    keys = jax.random.split(key, 6)
    aw1, ab1 = linear(keys[0], obs_dim, hidden)
    aw2, ab2 = linear(keys[1], hidden, hidden)
    aw3, ab3 = linear(keys[2], hidden, act_dim)
    cw1, cb1 = linear(keys[3], obs_dim, hidden)
    cw2, cb2 = linear(keys[4], hidden, hidden)
    cw3, cb3 = linear(keys[5], hidden, 1)
    return dict(aw1=aw1, ab1=ab1, aw2=aw2, ab2=ab2, aw3=aw3, ab3=ab3,
                cw1=cw1, cb1=cb1, cw2=cw2, cb2=cb2, cw3=cw3, cb3=cb3)


def reference_forward(x, p):
    h = jnp.tanh(x @ p["aw1"] + p["ab1"])
    h = jnp.tanh(h @ p["aw2"] + p["ab2"])
    logits = h @ p["aw3"] + p["ab3"]
    g = jnp.tanh(x @ p["cw1"] + p["cb1"])
    g = jnp.tanh(g @ p["cw2"] + p["cb2"])
    value = (g @ p["cw3"] + p["cb3"])[:, 0]
    return logits, value


if __name__ == "__main__":
    B, OBS_DIM, ACT_DIM, HIDDEN = 8, 16, 6, 32

    key = jax.random.PRNGKey(0)
    k_x, k_p = jax.random.split(key)
    x = jax.random.normal(k_x, (B, OBS_DIM), dtype=jnp.float32)
    params = init_params(k_p, OBS_DIM, ACT_DIM, HIDDEN)
    ref_logits, ref_value = reference_forward(x, params)

    # --- exactness check: fp32 MXU operands, tight tolerance ----------------
    w1_f32, w23_f32, b_f32 = pack_params(params, OBS_DIM, ACT_DIM, HIDDEN,
                                         mm_dtype=jnp.float32)
    logits, value = actor_critic_forward(x, w1_f32, w23_f32, b_f32, ACT_DIM)
    logits = jax.block_until_ready(logits)
    value = jax.block_until_ready(value)
    assert logits.shape == (B, ACT_DIM) and value.shape == (B,)
    assert jnp.allclose(logits, ref_logits, atol=1e-5, rtol=1e-5)
    assert jnp.allclose(value, ref_value, atol=1e-5, rtol=1e-5)

    # --- production path: bf16 MXU operands (fp32 accum/bias/tanh), looser tol
    w1_bf, w23_bf, b_bf = pack_params(params, OBS_DIM, ACT_DIM, HIDDEN,
                                      mm_dtype=jnp.bfloat16)
    logits_bf, value_bf = actor_critic_forward(x, w1_bf, w23_bf, b_bf, ACT_DIM)
    logits_bf = jax.block_until_ready(logits_bf)
    value_bf = jax.block_until_ready(value_bf)
    assert jnp.allclose(logits_bf, ref_logits, atol=5e-2, rtol=5e-2)
    assert jnp.allclose(value_bf, ref_value, atol=5e-2, rtol=5e-2)

    # --- multi-tile path (>=2 grid steps, padded batch rows) -----------------
    B2 = 600
    x2 = jax.random.normal(jax.random.PRNGKey(1), (B2, OBS_DIM), dtype=jnp.float32)
    logits2, value2 = actor_critic_forward(x2, w1_f32, w23_f32, b_f32, ACT_DIM)
    logits2 = jax.block_until_ready(logits2)
    value2 = jax.block_until_ready(value2)
    ref_logits2, ref_value2 = reference_forward(x2, params)
    assert logits2.shape == (B2, ACT_DIM) and value2.shape == (B2,)
    assert jnp.allclose(logits2, ref_logits2, atol=1e-5, rtol=1e-5)
    assert jnp.allclose(value2, ref_value2, atol=1e-5, rtol=1e-5)

    print("KERNEL_OK")
</pallas_src>

<mosaic_0001>
module attributes {stable_mosaic.version = 11 : i64} {
  func.func @actor_critic_kernel(%arg0: i32, %arg1: memref<8x16xf32, #tpu.memory_space<vmem>>, %arg2: memref<16x128xf32, #tpu.memory_space<vmem>>, %arg3: memref<2x128x128xf32, #tpu.memory_space<vmem>>, %arg4: memref<3x128xf32, #tpu.memory_space<vmem>>, %arg5: memref<8x128xf32, #tpu.memory_space<vmem>>) attributes {dimension_semantics = [#tpu.dimension_semantics<parallel>], iteration_bounds = array<i64: 1>, scalar_prefetch = 0 : i64, scratch_operands = 0 : i64, tpu.core_type = #tpu.core_type<tc>, window_params = [{transform_indices = @transform_0, window_bounds = array<i64: 8, 16>}, {pipeline_mode = #tpu.pipeline_mode<synchronous>, transform_indices = @transform_1, window_bounds = array<i64: 16, 128>}, {pipeline_mode = #tpu.pipeline_mode<synchronous>, transform_indices = @transform_2, window_bounds = array<i64: 2, 128, 128>}, {pipeline_mode = #tpu.pipeline_mode<synchronous>, transform_indices = @transform_3, window_bounds = array<i64: 3, 128>}, {transform_indices = @transform_4, window_bounds = array<i64: 8, 128>}]} {
    %c0 = arith.constant 0 : index
    %c0_0 = arith.constant 0 : index
    %0 = vector.load %arg4[%c0, %c0_0] : memref<3x128xf32, #tpu.memory_space<vmem>>, vector<3x128xf32>
    %c0_1 = arith.constant 0 : index
    %c0_2 = arith.constant 0 : index
    %1 = vector.load %arg1[%c0_1, %c0_2] : memref<8x16xf32, #tpu.memory_space<vmem>>, vector<8x16xf32>
    %c0_3 = arith.constant 0 : index
    %c0_4 = arith.constant 0 : index
    %2 = vector.load %arg2[%c0_3, %c0_4] : memref<16x128xf32, #tpu.memory_space<vmem>>, vector<16x128xf32>
    %cst = arith.constant dense<0.000000e+00> : vector<8x128xf32>
    %3 = tpu.matmul %1, %2, %cst {dimension_numbers = #tpu.dot_dimension_numbers<[1], [0], [0], [1], [0, 0, 1, 1], [], []>} : vector<8x16xf32>, vector<16x128xf32>, vector<8x128xf32> -> vector<8x128xf32>
    %4 = vector.extract_strided_slice %0 {offsets = [0, 0], sizes = [1, 128], strides = [1, 1]} : vector<3x128xf32> to vector<1x128xf32>
    %5 = vector.broadcast %4 : vector<1x128xf32> to vector<8x128xf32>
    %6 = arith.addf %3, %5 : vector<8x128xf32>
    %7 = math.tanh %6 : vector<8x128xf32>
    %c0_5 = arith.constant 0 : index
    %c0_6 = arith.constant 0 : index
    %c0_7 = arith.constant 0 : index
    %8 = vector.load %arg3[%c0_5, %c0_6, %c0_7] : memref<2x128x128xf32, #tpu.memory_space<vmem>>, vector<1x128x128xf32>
    %9 = vector.shape_cast %8 : vector<1x128x128xf32> to vector<128x128xf32>
    %cst_8 = arith.constant dense<0.000000e+00> : vector<8x128xf32>
    %10 = tpu.matmul %7, %9, %cst_8 {dimension_numbers = #tpu.dot_dimension_numbers<[1], [0], [0], [1], [0, 0, 1, 1], [], []>} : vector<8x128xf32>, vector<128x128xf32>, vector<8x128xf32> -> vector<8x128xf32>
    %11 = vector.extract_strided_slice %0 {offsets = [1, 0], sizes = [1, 128], strides = [1, 1]} : vector<3x128xf32> to vector<1x128xf32>
    %12 = vector.broadcast %11 : vector<1x128xf32> to vector<8x128xf32>
    %13 = arith.addf %10, %12 : vector<8x128xf32>
    %14 = math.tanh %13 : vector<8x128xf32>
    %c1 = arith.constant 1 : index
    %c0_9 = arith.constant 0 : index
    %c0_10 = arith.constant 0 : index
    %15 = vector.load %arg3[%c1, %c0_9, %c0_10] : memref<2x128x128xf32, #tpu.memory_space<vmem>>, vector<1x128x128xf32>
    %16 = vector.shape_cast %15 : vector<1x128x128xf32> to vector<128x128xf32>
    %cst_11 = arith.constant dense<0.000000e+00> : vector<8x128xf32>
    %17 = tpu.matmul %14, %16, %cst_11 {dimension_numbers = #tpu.dot_dimension_numbers<[1], [0], [0], [1], [0, 0, 1, 1], [], []>} : vector<8x128xf32>, vector<128x128xf32>, vector<8x128xf32> -> vector<8x128xf32>
    %18 = vector.extract_strided_slice %0 {offsets = [2, 0], sizes = [1, 128], strides = [1, 1]} : vector<3x128xf32> to vector<1x128xf32>
    %19 = vector.broadcast %18 : vector<1x128xf32> to vector<8x128xf32>
    %20 = arith.addf %17, %19 : vector<8x128xf32>
    %c0_12 = arith.constant 0 : index
    %c0_13 = arith.constant 0 : index
    %21 = vector.load %arg5[%c0_12, %c0_13] : memref<8x128xf32, #tpu.memory_space<vmem>>, vector<8x128xf32>
    tpu.vector_store %arg5[%c0_12, %c0_13], %20 {strides = array<i32>} : memref<8x128xf32, #tpu.memory_space<vmem>>, vector<8x128xf32>,
    return
  }
  func.func @transform_0(%arg0: i32) -> (i32, i32) {
    %c0_i32 = arith.constant 0 : i32
    %c0_i32_0 = arith.constant 0 : i32
    return %arg0, %c0_i32 : i32, i32
  }
  func.func @transform_1(%arg0: i32) -> (i32, i32) {
    %c0_i32 = arith.constant 0 : i32
    %c0_i32_0 = arith.constant 0 : i32
    %c0_i32_1 = arith.constant 0 : i32
    return %c0_i32, %c0_i32_0 : i32, i32
  }
  func.func @transform_2(%arg0: i32) -> (i32, i32, i32) {
    %c0_i32 = arith.constant 0 : i32
    %c0_i32_0 = arith.constant 0 : i32
    %c0_i32_1 = arith.constant 0 : i32
    %c0_i32_2 = arith.constant 0 : i32
    return %c0_i32, %c0_i32_0, %c0_i32_1 : i32, i32, i32
  }
  func.func @transform_3(%arg0: i32) -> (i32, i32) {
    %c0_i32 = arith.constant 0 : i32
    %c0_i32_0 = arith.constant 0 : i32
    %c0_i32_1 = arith.constant 0 : i32
    return %c0_i32, %c0_i32_0 : i32, i32
  }
  func.func @transform_4(%arg0: i32) -> (i32, i32) {
    %c0_i32 = arith.constant 0 : i32
    %c0_i32_0 = arith.constant 0 : i32
    return %arg0, %c0_i32 : i32, i32
  }
}

</mosaic_0001>

<bundles_post_ra>
// kernel: tpu_custom_call.1
= control target key start
LH: loop header
LB: loop body
LE: loop exit
PB: predicated region body
PF: predicated region fallthrough
CT: control target
= control target key end

     0   :  { %9 = vsyncpa [#allocation3], 0  ;;  %s640_s0 = inlined_call_operand.hbm [shape: f32[8,16], index: 0, kind: input, shape index: {}]   ;;  %s641_s1 = inlined_call_operand.hbm [shape: f32[16,128], index: 1, kind: input, shape index: {}]   ;;  %s642_s2 = inlined_call_operand.hbm [shape: f32[2,128,128], index: 2, kind: input, shape index: {}]   ;;  %s643_s3 = inlined_call_operand.vmem [shape: f32[3,128], index: 3, kind: input, shape index: {}]   ;;  %s644_s4 = inlined_call_operand.hbm [shape: f32[8,128], index: 4, kind: output, shape index: {}]  }
   0x1   :  { %10 = vsyncpa [#allocation6], 0 }
   0x2   :  { %11 = vsyncpa [#allocation4], 0  ;;  %s552_s15 = smov [#allocation5]  }
   0x3   :  { %s27_s16 = sshll.u32 %s552_s15, 4  ;;  %s28_s16 = int_to_ptr.vmem [resolvable:$true] %s27_s16 }
   0x4   :  { %s474_s17 = scalar_lea.vmem %s28_s16, 256  ;;  %p479_p1 = scmp.lt.s32.totalorder %s28_s16, %s28_s16 }
   0x5   :  { %p475_p0 = scmp.ne.s32.totalorder %s28_s16, %s474_s17  ;;  %p480_p2 = scmp.lt.s32.totalorder %s474_s17, %s474_s17 }
   0x7   :  { %p481_p3 = por %p480_p2, %p479_p1 }
   0x9   :  { %p482_p4 = pnand %p481_p3, %p475_p0 }
   0xb   :  { %485 = shalt.err (!%p482_p4)
}
   0xc   :  { %s553_s18 = smov 128   ;;  %s554_s19 = smov 8  }
   0xd   :  { %33 = dma.hbm_to_vmem [thread:$0]  %s641_s1, 256, %s28_s16, [#allocation6], %s553_s18, %s553_s18, %s554_s19  }
   0xe   :  { %s555_s22 = smov [#allocation2]   ;;  %s556_s24 = smov [#allocation7]  }
   0xf   :  { %s18_s23 = sshll.u32 %s555_s22, 4  ;;  %s39_s25 = sshll.u32 %s556_s24, 4  ;;  %s19_s23 = int_to_ptr.vmem [resolvable:$true] %s18_s23  ;;  %s40_s25 = int_to_ptr.vmem [resolvable:$true] %s39_s25 }
  0x10   :  { %s494_s26 = scalar_lea.vmem %s19_s23, 128  ;;  %p499_p6 = scmp.lt.s32.totalorder %s19_s23, %s19_s23 }
  0x11   :  { %p495_p5 = scmp.ne.s32.totalorder %s19_s23, %s494_s26  ;;  %p500_p7 = scmp.lt.s32.totalorder %s494_s26, %s494_s26 }
  0x13   :  { %p501_p8 = por %p500_p7, %p499_p6 }
  0x15   :  { %p502_p9 = pnand %p501_p8, %p495_p5 }
  0x17   :  { %505 = shalt.err (!%p502_p9)
}
  0x18   :  { %21 = dma.hbm_to_vmem [thread:$0]  %s640_s0, 128, %s19_s23, [#allocation3]  }
  0x19   :  { %s514_s29 = scalar_lea.vmem %s40_s25, 4096  ;;  %p519_p11 = scmp.lt.s32.totalorder %s40_s25, %s40_s25 }
  0x1a   :  { %p515_p10 = scmp.ne.s32.totalorder %s40_s25, %s514_s29  ;;  %p520_p12 = scmp.lt.s32.totalorder %s514_s29, %s514_s29 }
  0x1c   :  { %p521_p13 = por %p520_p12, %p519_p11 }
  0x1e   :  { %p522_p0 = pnand %p521_p13, %p515_p10 }
  0x20   :  { %525 = shalt.err (!%p522_p0)
}
  0x21   :  { %45 = dma.hbm_to_vmem [thread:$0]  %s642_s2, 4096, %s40_s25, [#allocation6], %s553_s18, %s553_s18, %s554_s19  }
  0x22   :  { %546 = dma.done.wait [#allocation3], 128  }
  0x23   :  { %547 = vsyncadd [#allocation3], 4294967168 }
  0x24   :  { %548 = dma.done.wait [#allocation6], 4352  }
  0x25   :  { %549 = vsyncadd [#allocation6], 4294962944  ;;  %v557_v0 = vmov 0.0   ;;  %vm558_vm0 = vmmov 0   ;;  %v60_v1 = vld [vmem:[#allocation5 + $0x8] sm:$0xff]  ;;  %v59_v2 = vld [vmem:[#allocation5] sm:$0xff]  ;;  %v61_v27 = vlaneseq }
  0x26   :  { %377 = vmatprep.subr.mxu0 %v557_v0  ;;  %381 = vmatprep.mubr.msk.f32.mxu0 %vm558_vm0, %v557_v0  ;;  %v58_v3 = vld [vmem:[#allocation2] sm:$0xff]  ;;  %vm65_vm1 = vcmask 130048   ;;  %v155_v4 = vld [vmem:[#allocation7 + $0x78] sm:$0xff]  ;;  %v154_v5 = vld [vmem:[#allocation7 + $0x70] sm:$0xff] }
  0x27   :  { %384 = vmatprep.subr.mxu1 %v557_v0  ;;  %416 = vmatprep.mubr.msk.f32.mxu1 %vm558_vm0, %v557_v0  ;;  %v153_v6 = vld [vmem:[#allocation7 + $0x68] sm:$0xff]  ;;  %v152_v7 = vld [vmem:[#allocation7 + $0x60] sm:$0xff]  ;;  %v151_v8 = vld [vmem:[#allocation7 + $0x58] sm:$0xff]  ;;  %v62_v28 = vshrl.u32 %v61_v27, 7 }
  0x28   :  { %378 = vmatpush3.msra.mxu0 %v60_v1  ;;  %385 = vmatpush3.msra.mxu1 %v155_v4  ;;  %v150_v9 = vld [vmem:[#allocation7 + $0x50] sm:$0xff]  ;;  %v149_v10 = vld [vmem:[#allocation7 + $0x48] sm:$0xff]  ;;  %v148_v11 = vld [vmem:[#allocation7 + $0x40] sm:$0xff] }
  0x29   :  { %379 = vmatprep.subr.mxu0 %v557_v0  ;;  %386 = vmatprep.subr.mxu1 %v557_v0  ;;  %v147_v12 = vld [vmem:[#allocation7 + $0x38] sm:$0xff]  ;;  %v146_v13 = vld [vmem:[#allocation7 + $0x30] sm:$0xff]  ;;  %v145_v14 = vld [vmem:[#allocation7 + $0x28] sm:$0xff]  ;;  %v63_v29 = vsub.s32 0, %v62_v28  ;;  %v158_v45 = vsub.s32 1, %v62_v28  ;;  %v250_v51 = vsub.s32 2, %v62_v28 }
  0x2a   :  { %380 = vmatpush3.msra.mxu0 %v59_v2  ;;  %387 = vmatpush3.msra.mxu1 %v154_v5  ;;  %v144_v15 = vld [vmem:[#allocation7 + $0x20] sm:$0xff]  ;;  %v143_v16 = vld [vmem:[#allocation7 + $0x18] sm:$0xff]  ;;  %v142_v17 = vld [vmem:[#allocation7 + $0x10] sm:$0xff] }
  0x2b   :  { %382 = vmatmul.mubr.msk.f32.vlgmr.msra.gmra.mxu0 %vm65_vm1, %v58_v3  ;;  %388 = vmatprep.subr.mxu1 %v557_v0  ;;  %v141_v18 = vld [vmem:[#allocation7 + $0x8] sm:$0xff]  ;;  %v140_v19 = vld [vmem:[#allocation7] sm:$0xff]  ;;  %v247_v20 = vld [vmem:[#allocation7 + $0xf8] sm:$0xff] }
  0x2c   :  { %419 = vmatprep.subr.mxu0 %v557_v0  ;;  %389 = vmatpush3.msra.mxu1 %v153_v6  ;;  %v246_v21 = vld [vmem:[#allocation7 + $0xf0] sm:$0xff]  ;;  %v245_v22 = vld [vmem:[#allocation7 + $0xe8] sm:$0xff]  ;;  %v244_v23 = vld [vmem:[#allocation7 + $0xe0] sm:$0xff] }
  0x2d   :  { %451 = vmatprep.mubr.msk.f32.mxu0 %vm558_vm0, %v557_v0  ;;  %390 = vmatprep.subr.mxu1 %v557_v0  ;;  %v243_v24 = vld [vmem:[#allocation7 + $0xd8] sm:$0xff]  ;;  %v242_v25 = vld [vmem:[#allocation7 + $0xd0] sm:$0xff]  ;;  %v241_v26 = vld [vmem:[#allocation7 + $0xc8] sm:$0xff] }
  0x2e   :  { %391 = vmatpush3.msra.mxu1 %v152_v7  ;;  %420 = vmatpush3.msra.mxu0 %v247_v20  ;;  %v57_v30 = vld [vmem:[%s643_s3] sm:$0x7]  ;;  %v240_v36 = vld [vmem:[#allocation7 + $0xc0] sm:$0xff]  ;;  %v239_v37 = vld [vmem:[#allocation7 + $0xb8] sm:$0xff]  ;;  %s559_s3 = smov [#allocation8]  }
  0x2f   :  { %392 = vmatprep.subr.mxu1 %v557_v0  ;;  %421 = vmatprep.subr.mxu0 %v557_v0  ;;  %v64_v31 = vrot.slane %v57_v30, %v63_v29  ;;  %v238_v38 = vld [vmem:[#allocation7 + $0xb0] sm:$0xff]  ;;  %v237_v39 = vld [vmem:[#allocation7 + $0xa8] sm:$0xff]  ;;  %v236_v40 = vld [vmem:[#allocation7 + $0xa0] sm:$0xff]  ;;  %v159_v46 = vrot.slane %v57_v30, %v158_v45  ;;  %v251_v52 = vrot.slane %v57_v30, %v250_v51  ;;  %s329_s5 = sshll.u32 %s559_s3, 4  ;;  %s330_s5 = int_to_ptr.vmem [resolvable:$true] %s329_s5 }
  0x30   :  { %393 = vmatpush3.msra.mxu1 %v151_v8  ;;  %422 = vmatpush3.msra.mxu0 %v246_v21  ;;  %v235_v41 = vld [vmem:[#allocation7 + $0x98] sm:$0xff]  ;;  %v234_v42 = vld [vmem:[#allocation7 + $0x90] sm:$0xff]  ;;  %v233_v43 = vld [vmem:[#allocation7 + $0x88] sm:$0xff]  ;;  %s526_s6 = scalar_lea.vmem %s330_s5, 128  ;;  %p531_p2 = scmp.lt.s32.totalorder %s330_s5, %s330_s5 }
  0x31   :  { %394 = vmatprep.subr.mxu1 %v557_v0  ;;  %423 = vmatprep.subr.mxu0 %v557_v0  ;;  %v232_v44 = vld [vmem:[#allocation7 + $0x80] sm:$0xff]  ;;  %p527_p1 = scmp.ne.s32.totalorder %s330_s5, %s526_s6  ;;  %p532_p3 = scmp.lt.s32.totalorder %s526_s6, %s526_s6 }
  0x32   :  { %395 = vmatpush3.msra.mxu1 %v150_v9  ;;  %424 = vmatpush3.msra.mxu0 %v245_v22 }
  0x33   :  { %396 = vmatprep.subr.mxu1 %v557_v0  ;;  %425 = vmatprep.subr.mxu0 %v557_v0  ;;  %p533_p4 = por %p532_p3, %p531_p2 }
  0x34   :  { %397 = vmatpush3.msra.mxu1 %v149_v10  ;;  %426 = vmatpush3.msra.mxu0 %v244_v23 }
  0x35   :  { %398 = vmatprep.subr.mxu1 %v557_v0  ;;  %427 = vmatprep.subr.mxu0 %v557_v0  ;;  %p534_p5 = pnand %p533_p4, %p527_p1 }
  0x36   :  { %399 = vmatpush3.msra.mxu1 %v148_v11  ;;  %428 = vmatpush3.msra.mxu0 %v243_v24 }
  0x37   :  { %400 = vmatprep.subr.mxu1 %v557_v0  ;;  %429 = vmatprep.subr.mxu0 %v557_v0 }
  0x38   :  { %401 = vmatpush3.msra.mxu1 %v147_v12  ;;  %430 = vmatpush3.msra.mxu0 %v242_v25 }
  0x39   :  { %402 = vmatprep.subr.mxu1 %v557_v0  ;;  %431 = vmatprep.subr.mxu0 %v557_v0 }
  0x3a   :  { %403 = vmatpush3.msra.mxu1 %v146_v13  ;;  %432 = vmatpush3.msra.mxu0 %v241_v26 }
  0x3b   :  { %404 = vmatprep.subr.mxu1 %v557_v0  ;;  %433 = vmatprep.subr.mxu0 %v557_v0 }
  0x3c   :  { %405 = vmatpush3.msra.mxu1 %v145_v14  ;;  %434 = vmatpush3.msra.mxu0 %v240_v36 }
  0x3d   :  { %406 = vmatprep.subr.mxu1 %v557_v0  ;;  %435 = vmatprep.subr.mxu0 %v557_v0 }
  0x3e   :  { %407 = vmatpush3.msra.mxu1 %v144_v15  ;;  %436 = vmatpush3.msra.mxu0 %v239_v37 }
  0x3f   :  { %408 = vmatprep.subr.mxu1 %v557_v0  ;;  %437 = vmatprep.subr.mxu0 %v557_v0 }
  0x40   :  { %409 = vmatpush3.msra.mxu1 %v143_v16  ;;  %438 = vmatpush3.msra.mxu0 %v238_v38 }
  0x41   :  { %410 = vmatprep.subr.mxu1 %v557_v0  ;;  %439 = vmatprep.subr.mxu0 %v557_v0 }
  0x42   :  { %411 = vmatpush3.msra.mxu1 %v142_v17  ;;  %440 = vmatpush3.msra.mxu0 %v237_v39 }
  0x43   :  { %412 = vmatprep.subr.mxu1 %v557_v0  ;;  %441 = vmatprep.subr.mxu0 %v557_v0 }
  0x44   :  { %413 = vmatpush3.msra.mxu1 %v141_v18  ;;  %442 = vmatpush3.msra.mxu0 %v236_v40 }
  0x45   :  { %414 = vmatprep.subr.mxu1 %v557_v0  ;;  %443 = vmatprep.subr.mxu0 %v557_v0 }
  0x46   :  { %415 = vmatpush3.msra.mxu1 %v140_v19  ;;  %444 = vmatpush3.msra.mxu0 %v235_v41 }
  0x47   :  { %445 = vmatprep.subr.mxu0 %v557_v0 }
  0x48   :  { %446 = vmatpush3.msra.mxu0 %v234_v42 }
  0x49   :  { %447 = vmatprep.subr.mxu0 %v557_v0 }
  0x4a   :  { %448 = vmatpush3.msra.mxu0 %v233_v43 }
  0x4b   :  { %449 = vmatprep.subr.mxu0 %v557_v0 }
  0x4c   :  { %450 = vmatpush3.msra.mxu0 %v232_v44 }
  0xeb   :  { %v135_v32 = vpop.f32.mrf.mxu0 }
  0xec   :  { %v136_v33 = vadd.f32 %v135_v32, %v64_v31 }
  0xed   :  { %v383_v34 = vpop.f32.mrf.mxu0 }
  0xee   :  { %462 = vtanh.f32 %v136_v33 }
  0xfb   :  { %v463_v35 = vpop.eup %462 }
  0xfc   :  { %417 = vmatmul.mubr.f32.vlgmr.msra.gmra.mxu1 %v463_v35 }
 0x1bc   :  { %v226_v47 = vpop.f32.mrf.mxu1 }
 0x1bd   :  { %v227_v48 = vadd.f32 %v226_v47, %v159_v46 }
 0x1be   :  { %v418_v49 = vpop.f32.mrf.mxu1 }
 0x1bf   :  { %464 = vtanh.f32 %v227_v48 }
 0x1cc   :  { %v465_v50 = vpop.eup %464 }
 0x1cd   :  { %452 = vmatmul.mubr.f32.vlgmr.msra.gmra.mxu0 %v465_v50 }
 0x28d   :  { %v318_v53 = vpop.f32.mrf.mxu0 }
 0x28e   :  { %v319_v54 = vadd.f32 %v318_v53, %v251_v52 }
 0x28f   :  { %v453_v55 = vpop.f32.mrf.mxu0 }
 0x290   :  { %322 = vst [vmem:[#allocation8] sm:$0xff] %v319_v54 }
 0x291   :  { %537 = shalt.err (!%p534_p5)
}
 0x292   :  { %332 = dma.vmem_to_hbm [thread:$0]  %s330_s5, 128, %s644_s4, [#allocation4]  }
 0x293   :  { %550 = dma.done.wait [#allocation4], 128  }
 0x294   :  { %551 = vsyncadd [#allocation4], 4294967168 }
 0x295   :  { %336 = vsyncpa [#allocation3], 1 }
 0x296   :  { %337 = vsyncpa [#allocation6], 1 }
 0x297   :  { %338 = vsyncpa [#allocation4], 1 }

</bundles_post_ra>
